<compile_context>
chip_gen: v5e
topology: v5e:2x2
jax: 0.10.0
libtpu: 0.0.40
codegen_flags: <defaults>
</compile_context>

<pallas_src>
import jax
import jax.numpy as jnp
from jax.experimental import pallas as pl
from jax.experimental.pallas import tpu as pltpu


def _wnet2_fused_kernel(x_ref, w1_ref, b1_ref, w2_ref, b2_ref, out_ref):
    # x_ref: (TILE_B, in)   w1_ref: (in, 2H)   b1_ref: (1, 2H)
    # w2_ref: (2H, 2*out)   b2_ref: (1, 2*out) out_ref: (TILE_B, 2*out)
    x = x_ref[...]
    h = jnp.dot(x, w1_ref[...], preferred_element_type=jnp.float32) + b1_ref[...]
    h = jnp.maximum(h, 0.0)                                   # ReLU (f32, VPU)
    y = jnp.dot(h, w2_ref[...], preferred_element_type=jnp.float32) + b2_ref[...]
    out_ref[...] = jax.nn.sigmoid(y).astype(out_ref.dtype)    # sigmoid in f32 (EUP), cast at store


def _fuse_params(params):
    """Concatenate the two heads: one wide first layer, one block-diagonal second layer."""
    hidden = params["w1a"].shape[1]
    out_dim = params["w2a"].shape[1]
    w1 = jnp.concatenate([params["w1a"], params["w1b"]], axis=1)            # (in, 2H)
    b1 = jnp.concatenate([params["b1a"], params["b1b"]], axis=1)            # (1, 2H)
    zeros = jnp.zeros((hidden, out_dim), params["w2a"].dtype)
    w2 = jnp.concatenate(
        [jnp.concatenate([params["w2a"], zeros], axis=1),
         jnp.concatenate([zeros, params["w2b"]], axis=1)], axis=0)          # (2H, 2*out)
    b2 = jnp.concatenate([params["b2a"], params["b2b"]], axis=1)            # (1, 2*out)
    return w1, b1, w2, b2


def wnet2_forward(x, params, *, tile_b=512):
    """x: (B, input_dim). params: dict of per-head weights/biases in (in, out) layout.
    Returns (out1, out2), each (B, output_dim)."""
    B, in_dim = x.shape
    hidden = params["w1a"].shape[1]
    out_dim = params["w2a"].shape[1]
    two_h = 2 * hidden
    two_out = 2 * out_dim

    w1, b1, w2, b2 = _fuse_params(params)

    # Batch tile: multiple of 8 (sublane constraint) unless it covers the whole batch.
    tile_b = min(tile_b, B)
    if tile_b < B:
        tile_b = max(8, (tile_b // 8) * 8)
    grid = (pl.cdiv(B, tile_b),)

    itemsize = jnp.dtype(x.dtype).itemsize
    f32 = 4
    # VMEM budget: double-buffered x/out tiles + (conservatively double-counted) resident
    # weights + f32 intermediates, with headroom.  Clamped so it fits v7x's 64 MiB VMEM and
    # overrides v5e's 16 MiB scoped default when larger tiles are requested.
    vmem_est = (
        2 * tile_b * in_dim * itemsize            # x tiles (double buffered)
        + 2 * tile_b * two_out * itemsize         # out tiles (double buffered)
        + 2 * (w1.size + b1.size + w2.size + b2.size) * w1.dtype.itemsize
        + tile_b * (two_h + two_out) * f32        # h / y intermediates
    )
    vmem_limit = min(max(int(1.5 * vmem_est) + (4 << 20), 16 << 20), 48 << 20)

    cost = pl.CostEstimate(
        flops=2 * B * in_dim * two_h + 2 * B * two_h * two_out,
        transcendentals=B * two_out,
        bytes_accessed=(B * in_dim + B * two_out) * itemsize
        + (w1.size + b1.size + w2.size + b2.size) * w1.dtype.itemsize,
    )

    const_spec = lambda shape: pl.BlockSpec(shape, lambda i: (0, 0))  # resident in VMEM

    fused_out = pl.pallas_call(
        _wnet2_fused_kernel,
        out_shape=jax.ShapeDtypeStruct((B, two_out), x.dtype),
        grid=grid,
        in_specs=[
            pl.BlockSpec((tile_b, in_dim), lambda i: (i, 0)),   # x: batch-tiled, pipelined
            const_spec((in_dim, two_h)),                        # W1
            const_spec((1, two_h)),                             # b1
            const_spec((two_h, two_out)),                       # W2 (block-diagonal)
            const_spec((1, two_out)),                           # b2
        ],
        out_specs=pl.BlockSpec((tile_b, two_out), lambda i: (i, 0)),
        compiler_params=pltpu.CompilerParams(
            dimension_semantics=("parallel",),                  # batch tiles independent (2 TCs on v7x)
            vmem_limit_bytes=vmem_limit,
        ),
        cost_estimate=cost,
    )(x, w1, b1, w2, b2)

    # Split the fused (B, 2*out) slab back into the two heads (cheap lane slice outside the kernel).
    return fused_out[:, :out_dim], fused_out[:, out_dim:]


def init_params(key, input_dim, hidden_dim, output_dim):
    """Deterministic synthetic init. Weights stored as (in_features, out_features);
    biases stored as (1, out_features)."""
    ks = jax.random.split(key, 8)

    def lin(kw, kb, din, dout):
        bound = 1.0 / jnp.sqrt(din)
        w = jax.random.uniform(kw, (din, dout), jnp.float32, -bound, bound)
        b = jax.random.uniform(kb, (1, dout), jnp.float32, -bound, bound)
        return w, b

    w1a, b1a = lin(ks[0], ks[1], input_dim, hidden_dim)
    w2a, b2a = lin(ks[2], ks[3], hidden_dim, output_dim)
    w1b, b1b = lin(ks[4], ks[5], input_dim, hidden_dim)
    w2b, b2b = lin(ks[6], ks[7], hidden_dim, output_dim)
    return dict(w1a=w1a, b1a=b1a, w2a=w2a, b2a=b2a,
                w1b=w1b, b1b=b1b, w2b=w2b, b2b=b2b)


def reference_forward(x, p):
    def head(w1, b1, w2, b2):
        h = jnp.maximum(x @ w1 + b1, 0.0)
        return jax.nn.sigmoid(h @ w2 + b2)
    return (head(p["w1a"], p["b1a"], p["w2a"], p["b2a"]),
            head(p["w1b"], p["b1b"], p["w2b"], p["b2b"]))


if __name__ == "__main__":
    input_dim, hidden_dim, output_dim = 16, 32, 8
    batch = 8

    key = jax.random.PRNGKey(0)
    k_x, k_p = jax.random.split(key)
    x = jax.random.normal(k_x, (batch, input_dim), jnp.float32)
    params = init_params(k_p, input_dim, hidden_dim, output_dim)

    fwd = jax.jit(wnet2_forward)
    out1, out2 = fwd(x, params)
    jax.block_until_ready((out1, out2))

    ref1, ref2 = reference_forward(x, params)
    assert out1.shape == (batch, output_dim) and out2.shape == (batch, output_dim)
    assert jnp.allclose(out1, ref1, atol=1e-5), "head 1 mismatch"
    assert jnp.allclose(out2, ref2, atol=1e-5), "head 2 mismatch"

    # Also exercise the multi-tile (gridded, partial-last-block) path.
    big_b = 1100
    xb = jax.random.normal(jax.random.PRNGKey(1), (big_b, input_dim), jnp.float32)
    o1b, o2b = jax.jit(wnet2_forward)(xb, params)
    jax.block_until_ready((o1b, o2b))
    r1b, r2b = reference_forward(xb, params)
    assert jnp.allclose(o1b, r1b, atol=1e-5) and jnp.allclose(o2b, r2b, atol=1e-5), "big-batch mismatch"

    print("KERNEL_OK")
</pallas_src>

<mosaic_0001>
module attributes {stable_mosaic.version = 11 : i64} {
  func.func @_wnet2_fused_kernel(%arg0: i32, %arg1: memref<8x16xf32, #tpu.memory_space<vmem>>, %arg2: memref<16x64xf32, #tpu.memory_space<vmem>>, %arg3: memref<1x64xf32, #tpu.memory_space<vmem>>, %arg4: memref<64x16xf32, #tpu.memory_space<vmem>>, %arg5: memref<1x16xf32, #tpu.memory_space<vmem>>, %arg6: memref<8x16xf32, #tpu.memory_space<vmem>>) attributes {dimension_semantics = [#tpu.dimension_semantics<parallel>], iteration_bounds = array<i64: 1>, scalar_prefetch = 0 : i64, scratch_operands = 0 : i64, tpu.core_type = #tpu.core_type<tc>, window_params = [{transform_indices = @transform_0, window_bounds = array<i64: 8, 16>}, {pipeline_mode = #tpu.pipeline_mode<synchronous>, transform_indices = @transform_1, window_bounds = array<i64: 16, 64>}, {pipeline_mode = #tpu.pipeline_mode<synchronous>, transform_indices = @transform_2, window_bounds = array<i64: 1, 64>}, {pipeline_mode = #tpu.pipeline_mode<synchronous>, transform_indices = @transform_3, window_bounds = array<i64: 64, 16>}, {pipeline_mode = #tpu.pipeline_mode<synchronous>, transform_indices = @transform_4, window_bounds = array<i64: 1, 16>}, {transform_indices = @transform_5, window_bounds = array<i64: 8, 16>}]} {
    %c0 = arith.constant 0 : index
    %c0_0 = arith.constant 0 : index
    %0 = vector.load %arg1[%c0, %c0_0] : memref<8x16xf32, #tpu.memory_space<vmem>>, vector<8x16xf32>
    %c0_1 = arith.constant 0 : index
    %c0_2 = arith.constant 0 : index
    %1 = vector.load %arg2[%c0_1, %c0_2] : memref<16x64xf32, #tpu.memory_space<vmem>>, vector<16x64xf32>
    %cst = arith.constant dense<0.000000e+00> : vector<8x64xf32>
    %2 = tpu.matmul %0, %1, %cst {dimension_numbers = #tpu.dot_dimension_numbers<[1], [0], [0], [1], [0, 0, 1, 1], [], []>} : vector<8x16xf32>, vector<16x64xf32>, vector<8x64xf32> -> vector<8x64xf32>
    %c0_3 = arith.constant 0 : index
    %c0_4 = arith.constant 0 : index
    %3 = vector.load %arg3[%c0_3, %c0_4] : memref<1x64xf32, #tpu.memory_space<vmem>>, vector<1x64xf32>
    %4 = vector.broadcast %3 : vector<1x64xf32> to vector<8x64xf32>
    %5 = arith.addf %2, %4 : vector<8x64xf32>
    %cst_5 = arith.constant 0.000000e+00 : f32
    %6 = vector.broadcast %cst_5 : f32 to vector<8x64xf32>
    %7 = arith.maximumf %5, %6 : vector<8x64xf32>
    %c0_6 = arith.constant 0 : index
    %c0_7 = arith.constant 0 : index
    %8 = vector.load %arg4[%c0_6, %c0_7] : memref<64x16xf32, #tpu.memory_space<vmem>>, vector<64x16xf32>
    %cst_8 = arith.constant dense<0.000000e+00> : vector<8x16xf32>
    %9 = tpu.matmul %7, %8, %cst_8 {dimension_numbers = #tpu.dot_dimension_numbers<[1], [0], [0], [1], [0, 0, 1, 1], [], []>} : vector<8x64xf32>, vector<64x16xf32>, vector<8x16xf32> -> vector<8x16xf32>
    %c0_9 = arith.constant 0 : index
    %c0_10 = arith.constant 0 : index
    %10 = vector.load %arg5[%c0_9, %c0_10] : memref<1x16xf32, #tpu.memory_space<vmem>>, vector<1x16xf32>
    %11 = vector.broadcast %10 : vector<1x16xf32> to vector<8x16xf32>
    %12 = arith.addf %9, %11 : vector<8x16xf32>
    %13 = arith.negf %12 : vector<8x16xf32>
    %14 = math.exp %13 : vector<8x16xf32>
    %cst_11 = arith.constant 1.000000e+00 : f32
    %15 = vector.broadcast %cst_11 : f32 to vector<8x16xf32>
    %16 = arith.addf %15, %14 : vector<8x16xf32>
    %17 = arith.divf %15, %16 : vector<8x16xf32>
    %c0_12 = arith.constant 0 : index
    %c0_13 = arith.constant 0 : index
    %18 = vector.load %arg6[%c0_12, %c0_13] : memref<8x16xf32, #tpu.memory_space<vmem>>, vector<8x16xf32>
    tpu.vector_store %arg6[%c0_12, %c0_13], %17 {strides = array<i32>} : memref<8x16xf32, #tpu.memory_space<vmem>>, vector<8x16xf32>,
    return
  }
  func.func @transform_0(%arg0: i32) -> (i32, i32) {
    %c0_i32 = arith.constant 0 : i32
    %c0_i32_0 = arith.constant 0 : i32
    return %arg0, %c0_i32 : i32, i32
  }
  func.func @transform_1(%arg0: i32) -> (i32, i32) {
    %c0_i32 = arith.constant 0 : i32
    %c0_i32_0 = arith.constant 0 : i32
    %c0_i32_1 = arith.constant 0 : i32
    return %c0_i32, %c0_i32_0 : i32, i32
  }
  func.func @transform_2(%arg0: i32) -> (i32, i32) {
    %c0_i32 = arith.constant 0 : i32
    %c0_i32_0 = arith.constant 0 : i32
    %c0_i32_1 = arith.constant 0 : i32
    return %c0_i32, %c0_i32_0 : i32, i32
  }
  func.func @transform_3(%arg0: i32) -> (i32, i32) {
    %c0_i32 = arith.constant 0 : i32
    %c0_i32_0 = arith.constant 0 : i32
    %c0_i32_1 = arith.constant 0 : i32
    return %c0_i32, %c0_i32_0 : i32, i32
  }
  func.func @transform_4(%arg0: i32) -> (i32, i32) {
    %c0_i32 = arith.constant 0 : i32
    %c0_i32_0 = arith.constant 0 : i32
    %c0_i32_1 = arith.constant 0 : i32
    return %c0_i32, %c0_i32_0 : i32, i32
  }
  func.func @transform_5(%arg0: i32) -> (i32, i32) {
    %c0_i32 = arith.constant 0 : i32
    %c0_i32_0 = arith.constant 0 : i32
    return %arg0, %c0_i32 : i32, i32
  }
}

</mosaic_0001>

<bundles_post_ra>
// kernel: wnet2_forward.1
= control target key start
LH: loop header
LB: loop body
LE: loop exit
PB: predicated region body
PF: predicated region fallthrough
CT: control target
= control target key end

     0   :  { %vm27_vm0 = vcmask 130048   ;;  %vm64_vm1 = vcmask 523264   ;;  %s195_s1 = inlined_call_operand.vmem [shape: f32[16,64], index: 1, kind: input, shape index: {}]   ;;  %s196_s0 = inlined_call_operand.vmem [shape: f32[8,16], index: 0, kind: input, shape index: {}]   ;;  %s197_s3 = inlined_call_operand.vmem [shape: f32[64,16], index: 3, kind: input, shape index: {}]   ;;  %s198_s2 = inlined_call_operand.vmem [shape: f32[1,64], index: 2, kind: input, shape index: {}]   ;;  %s199_s4 = inlined_call_operand.vmem [shape: f32[1,16], index: 4, kind: input, shape index: {}]   ;;  %s200_s5 = inlined_call_operand.vmem [shape: f32[8,16], index: 5, kind: output, shape index: {}]  }
   0x1   :  { %v22_v0 = vld [vmem:[%s195_s1 + $0x8] sm:$0xff]  ;;  %v21_v1 = vld [vmem:[%s195_s1] sm:$0xff]  ;;  %v59_v3 = vld [vmem:[%s197_s3 + $0x38] sm:$0xff] }
   0x2   :  { %45 = vmatpush.msra.mxu0 %v22_v0  ;;  %v20_v2 = vld [vmem:[%s196_s0] sm:$0xff]  ;;  %v58_v4 = vld [vmem:[%s197_s3 + $0x30] sm:$0xff]  ;;  %76 = vmatpush.msra.mxu1 %v59_v3  ;;  %v57_v5 = vld [vmem:[%s197_s3 + $0x28] sm:$0xff] }
   0x3   :  { %v56_v6 = vld [vmem:[%s197_s3 + $0x20] sm:$0xff]  ;;  %v55_v7 = vld [vmem:[%s197_s3 + $0x18] sm:$0xff]  ;;  %v54_v8 = vld [vmem:[%s197_s3 + $0x10] sm:$0xff] }
   0x4   :  { %46 = vmatpush.msra.mxu0 %v21_v1  ;;  %77 = vmatpush.msra.mxu1 %v58_v4  ;;  %v53_v9 = vld [vmem:[%s197_s3 + $0x8] sm:$0xff]  ;;  %v52_v10 = vld [vmem:[%s197_s3] sm:$0xff] }
   0x5   :  { %112 = vmatmul.msk.f32.vlgmr.msra.gmra.mxu0 %vm27_vm0, %v20_v2  ;;  %v115_v11 = vld [vmem:[%s198_s2] ss:$0 sm:$0xff] }
   0x6   :  { %78 = vmatpush.msra.mxu1 %v57_v5  ;;  %v116_v15 = vld [vmem:[%s199_s4] ss:$0 sm:$0xff] }
   0x8   :  { %79 = vmatpush.msra.mxu1 %v56_v6 }
   0xa   :  { %80 = vmatpush.msra.mxu1 %v55_v7 }
   0xc   :  { %81 = vmatpush.msra.mxu1 %v54_v8 }
   0xe   :  { %82 = vmatpush.msra.mxu1 %v53_v9 }
  0x10   :  { %83 = vmatpush.msra.mxu1 %v52_v10 }
  0x82   :  { %v48_v12 = vpop.f32.mrf.mxu0 }
  0x83   :  { %v49_v13 = vadd.f32 %v115_v11, %v48_v12 }
  0x85   :  { %v51_v14 = vmax.f32 %v49_v13, 0.0 }
  0x87   :  { %113 = vmatmul.msk.f32.vlgmr.msra.gmra.mxu1 %vm64_vm1, %v51_v14 }
 0x104   :  { %v85_v16 = vpop.f32.mrf.mxu1 }
 0x105   :  { %v86_v17 = vadd.f32 %v116_v15, %v85_v16 }
 0x107   :  { %v114_v18 = vmul.f32 -1.442695, %v86_v17 }
 0x109   :  { %117 = vpow2.f32 %v114_v18 }
 0x10f   :  { %v118_v19 = vpop.eup %117 }
 0x110   :  { %v91_v20 = vadd.f32 1.0, %v118_v19 }
 0x112   :  { %119 = vrcp.f32 %v91_v20  ;;  %v103_v24 = vand.u32 2147483648, %v91_v20  ;;  %v101_v26 = vand.u32 2147483647, %v91_v20  ;;  %vm97_vm3 = vweird.f32 %v91_v20 }
 0x114   :  { %v104_v28 = vor.u32 1.1754944e-38, %v103_v24  ;;  %vm102_vm5 = vcmp.eq.f32.partialorder %v101_v26, 8.507059e+37 }
 0x118   :  { %v120_v21 = vpop.eup %119 }
 0x119   :  { %v93_v22 = vmul.f32 %v120_v21, %v91_v20  ;;  %vm98_vm2 = vweird.f32 %v120_v21 }
 0x11a   :  { %vm99_vm4 = vmor %vm97_vm3, %vm98_vm2 }
 0x11b   :  { %v94_v23 = vsub.f32 1.0, %v93_v22 }
 0x11d   :  { %v95_v25 = vmul.f32 %v120_v21, %v94_v23 }
 0x11f   :  { %v96_v27 = vadd.f32 %v120_v21, %v95_v25 }
 0x121   :  { %v100_v29 = vsel %vm99_vm4, %v120_v21, %v96_v27 }
 0x122   :  { %v105_v30 = vsel %vm102_vm5, %v104_v28, %v100_v29 }
 0x123   :  { %107 = vst.msk [vmem:[%s200_s5] sm:$0xff] %vm27_vm0, %v105_v30 }

</bundles_post_ra>
